<compile_context>
chip_gen: v7x
topology: tpu7x:2x2x1
jax: 0.10.0
libtpu: 0.0.40
codegen_flags: <defaults>
</compile_context>

<pallas_src>
import jax
import jax.numpy as jnp
from jax import lax
from jax.experimental import pallas as pl
from jax.experimental.pallas import tpu as pltpu


# --------------------------------------------------------------------------- #
# Kernel
# --------------------------------------------------------------------------- #
def _cmodrelu_kernel(thr_ref, re_ref, im_ref, ore_ref, oim_ref):
    # thr_ref: f32[1] in SMEM.  re/im tiles arrive in their native dtype and
    # are upcast to f32 on the VPU (free: VALU is nowhere near saturation).
    thr = thr_ref[0]
    re = re_ref[...].astype(jnp.float32)
    im = im_ref[...].astype(jnp.float32)
    # 1/max(|z|, 1e-5) == min(rsqrt(re^2+im^2), 1e5): one EUP rsqrt, no divide.
    # (rsqrt(0) = inf is clamped by the min, so |z| = 0 is handled exactly.)
    inv_mod = jnp.minimum(lax.rsqrt(re * re + im * im), 1e5)
    scale = jnp.maximum(1.0 - thr * inv_mod, 0.0)       # relu(1 - thr/|z|)
    ore_ref[...] = (re * scale).astype(ore_ref.dtype)   # store in native dtype
    oim_ref[...] = (im * scale).astype(oim_ref.dtype)


# --------------------------------------------------------------------------- #
# Tiling helpers
# --------------------------------------------------------------------------- #
_LANE_CHOICES = (512, 256, 128)   # prefer lane-dense slabs (unmasked vld/vst)


def _round_up(x, m):
    return ((x + m - 1) // m) * m


def _base_max_tile_rows():
    """Per-chip max rows of a (rows, 512) f32 tile.

    v7x: 3.2 TB/s HBM makes the ~0.35 us per-grid-step overhead proportionally
    larger, and (1024,512)x4x2 buffers = 16 MiB still fits its 32 MiB scoped
    VMEM default.  v5e/v6e stay at 512 rows (8 MiB), well inside the v5e
    16 MiB default.
    """
    try:
        kind = jax.devices()[0].device_kind.lower()
    except Exception:  # pragma: no cover - no device info available
        kind = ""
    return 1024 if "7" in kind else 512


def _pick_tiling(total, dtype):
    """Choose (lane, rows, tile_rows, padded_total, needs_pad)."""
    itemsize = jnp.dtype(dtype).itemsize
    sublane = max(8, 32 // itemsize)          # f32: 8, bf16/f16: 16, int8: 32

    lane = None
    for cand in _LANE_CHOICES:
        if total % cand == 0:
            lane = cand
            break
    needs_pad = lane is None
    if needs_pad:
        # Only for totals not divisible by 128 (rare for real layer shapes):
        # a single pad to the next multiple of 128 is unavoidable with a
        # lane-dense 2-D slab.
        lane = 128
        padded_total = _round_up(total, lane)
    else:
        padded_total = total
    rows = padded_total // lane

    # Keep per-step HBM bytes roughly constant across dtypes.
    max_rows = _base_max_tile_rows() * max(1, 4 // itemsize)

    n_tiles = pl.cdiv(rows, max_rows)
    if rows >= 2 * sublane:
        # At least 2 grid steps so the "parallel" axis can span both v7x
        # TensorCores; costs only one extra ~0.35 us step on single-core chips.
        n_tiles = max(n_tiles, 2)
    tile_r = _round_up(pl.cdiv(rows, n_tiles), sublane)   # balanced tiles
    if tile_r >= rows:
        tile_r = rows   # single block == full array dims (always legal)
    return lane, rows, tile_r, padded_total, needs_pad


# --------------------------------------------------------------------------- #
# Wrapper
# --------------------------------------------------------------------------- #
def cmodrelu(real, imag, threshold):
    """Apply CmodReLU to a complex tensor given as (real, imag) arrays."""
    assert real.shape == imag.shape and real.dtype == imag.dtype
    orig_shape = real.shape
    dtype = real.dtype
    total = real.size
    itemsize = jnp.dtype(dtype).itemsize

    lane, rows, tile_r, padded_total, needs_pad = _pick_tiling(total, dtype)

    re_flat = real.reshape(-1)
    im_flat = imag.reshape(-1)
    if needs_pad:
        # Padded zeros produce 0 * scale = 0 regardless of the sign of the
        # (learnable) threshold, and are sliced away below.
        pad = padded_total - total
        re_flat = jnp.pad(re_flat, (0, pad))
        im_flat = jnp.pad(im_flat, (0, pad))
    re2 = re_flat.reshape(rows, lane)
    im2 = im_flat.reshape(rows, lane)
    thr = jnp.asarray(threshold, jnp.float32).reshape(1)

    grid = (pl.cdiv(rows, tile_r),)
    # Default double buffering; this kernel is DMA-throughput bound, so spare
    # VMEM goes to bigger tiles, not pipeline_mode=pl.Buffered(3).
    vspec = pl.BlockSpec((tile_r, lane), lambda i: (i, 0))

    cost = pl.CostEstimate(
        flops=9 * total,              # ~9 VPU ops/element
        transcendentals=total,        # one EUP rsqrt/element
        bytes_accessed=4 * total * itemsize,   # 2 reads + 2 writes, native dtype
    )

    out_re, out_im = pl.pallas_call(
        _cmodrelu_kernel,
        out_shape=(
            jax.ShapeDtypeStruct((rows, lane), dtype),
            jax.ShapeDtypeStruct((rows, lane), dtype),
        ),
        grid=grid,
        in_specs=[
            pl.BlockSpec(memory_space=pltpu.MemorySpace.SMEM),  # threshold
            vspec,  # real tile
            vspec,  # imag tile
        ],
        out_specs=(vspec, vspec),
        compiler_params=pltpu.CompilerParams(
            dimension_semantics=("parallel",),   # shard steps across v7x TCs
            vmem_limit_bytes=32 * 1024 * 1024,   # headroom beyond v5e's 16 MiB
        ),
        cost_estimate=cost,
    )(thr, re2, im2)

    if needs_pad:
        out_re = out_re.reshape(-1)[:total]
        out_im = out_im.reshape(-1)[:total]
    return out_re.reshape(orig_shape), out_im.reshape(orig_shape)


def cmodrelu_ref(real, imag, threshold):
    real = real.astype(jnp.float32)
    imag = imag.astype(jnp.float32)
    modulus = jnp.maximum(jnp.sqrt(real * real + imag * imag), 1e-5)
    scale = jax.nn.relu(1.0 - threshold / modulus)
    return real * scale, imag * scale


if __name__ == "__main__":
    key = jax.random.PRNGKey(0)
    k_re, k_im, k_thr = jax.random.split(key, 3)

    # Small NCHW complex input: N=2, C=4, H=16, W=16 (as a re/im pair).
    shape = (2, 4, 16, 16)
    real = jax.random.normal(k_re, shape, dtype=jnp.float32)
    imag = jax.random.normal(k_im, shape, dtype=jnp.float32)

    # Learnable threshold: Parameter(torch.rand(1) * 0.25), deterministic init.
    threshold = (jax.random.uniform(k_thr, (1,), dtype=jnp.float32) * 0.25)[0]

    # --- f32 path --------------------------------------------------------- #
    out_re, out_im = cmodrelu(real, imag, threshold)
    out_re = jax.block_until_ready(out_re)
    out_im = jax.block_until_ready(out_im)
    ref_re, ref_im = cmodrelu_ref(real, imag, threshold)
    assert out_re.dtype == real.dtype and out_im.dtype == imag.dtype
    assert jnp.allclose(out_re, ref_re, atol=1e-5, rtol=1e-5)
    assert jnp.allclose(out_im, ref_im, atol=1e-5, rtol=1e-5)

    # --- bf16 path (native-dtype in-kernel cast) -------------------------- #
    real_bf = real.astype(jnp.bfloat16)
    imag_bf = imag.astype(jnp.bfloat16)
    obf_re, obf_im = cmodrelu(real_bf, imag_bf, threshold)
    obf_re = jax.block_until_ready(obf_re)
    obf_im = jax.block_until_ready(obf_im)
    rbf_re, rbf_im = cmodrelu_ref(real_bf, imag_bf, threshold)
    assert obf_re.dtype == jnp.bfloat16 and obf_im.dtype == jnp.bfloat16
    assert jnp.allclose(obf_re.astype(jnp.float32), rbf_re, atol=5e-2, rtol=5e-2)
    assert jnp.allclose(obf_im.astype(jnp.float32), rbf_im, atol=5e-2, rtol=5e-2)

    print("KERNEL_OK")
</pallas_src>

<mosaic_0001>
module attributes {stable_mosaic.version = 11 : i64} {
  func.func @_cmodrelu_kernel(%arg0: i32, %arg1: memref<1xf32, #tpu.memory_space<smem>>, %arg2: memref<4x512xf32, #tpu.memory_space<vmem>>, %arg3: memref<4x512xf32, #tpu.memory_space<vmem>>, %arg4: memref<4x512xf32, #tpu.memory_space<vmem>>, %arg5: memref<4x512xf32, #tpu.memory_space<vmem>>) attributes {dimension_semantics = [#tpu.dimension_semantics<parallel>], iteration_bounds = array<i64: 1>, scalar_prefetch = 0 : i64, scratch_operands = 0 : i64, tpu.core_type = #tpu.core_type<tc>, window_params = [{transform_indices = @transform_0, window_bounds = array<i64: 1>}, {transform_indices = @transform_1, window_bounds = array<i64: 4, 512>}, {transform_indices = @transform_2, window_bounds = array<i64: 4, 512>}, {transform_indices = @transform_3, window_bounds = array<i64: 4, 512>}, {transform_indices = @transform_4, window_bounds = array<i64: 4, 512>}]} {
    %c0 = arith.constant 0 : index
    %0 = memref.load %arg1[%c0] : memref<1xf32, #tpu.memory_space<smem>>
    %c0_0 = arith.constant 0 : index
    %c0_1 = arith.constant 0 : index
    %1 = vector.load %arg2[%c0_0, %c0_1] : memref<4x512xf32, #tpu.memory_space<vmem>>, vector<4x512xf32>
    %c0_2 = arith.constant 0 : index
    %c0_3 = arith.constant 0 : index
    %2 = vector.load %arg3[%c0_2, %c0_3] : memref<4x512xf32, #tpu.memory_space<vmem>>, vector<4x512xf32>
    %3 = arith.mulf %1, %1 : vector<4x512xf32>
    %4 = arith.mulf %2, %2 : vector<4x512xf32>
    %5 = arith.addf %3, %4 : vector<4x512xf32>
    %6 = math.rsqrt %5 : vector<4x512xf32>
    %cst = arith.constant 1.000000e+05 : f32
    %7 = vector.broadcast %cst : f32 to vector<4x512xf32>
    %8 = arith.minimumf %6, %7 : vector<4x512xf32>
    %9 = vector.broadcast %0 : f32 to vector<4x512xf32>
    %10 = arith.mulf %9, %8 : vector<4x512xf32>
    %cst_4 = arith.constant 1.000000e+00 : f32
    %11 = vector.broadcast %cst_4 : f32 to vector<4x512xf32>
    %12 = arith.subf %11, %10 : vector<4x512xf32>
    %cst_5 = arith.constant 0.000000e+00 : f32
    %13 = vector.broadcast %cst_5 : f32 to vector<4x512xf32>
    %14 = arith.maximumf %12, %13 : vector<4x512xf32>
    %15 = arith.mulf %1, %14 : vector<4x512xf32>
    %c0_6 = arith.constant 0 : index
    %c0_7 = arith.constant 0 : index
    %16 = vector.load %arg4[%c0_6, %c0_7] : memref<4x512xf32, #tpu.memory_space<vmem>>, vector<4x512xf32>
    tpu.vector_store %arg4[%c0_6, %c0_7], %15 {strides = array<i32>} : memref<4x512xf32, #tpu.memory_space<vmem>>, vector<4x512xf32>,
    %17 = arith.mulf %2, %14 : vector<4x512xf32>
    %c0_8 = arith.constant 0 : index
    %c0_9 = arith.constant 0 : index
    %18 = vector.load %arg5[%c0_8, %c0_9] : memref<4x512xf32, #tpu.memory_space<vmem>>, vector<4x512xf32>
    tpu.vector_store %arg5[%c0_8, %c0_9], %17 {strides = array<i32>} : memref<4x512xf32, #tpu.memory_space<vmem>>, vector<4x512xf32>,
    return
  }
  func.func @transform_0(%arg0: i32) -> i32 {
    %c0_i32 = arith.constant 0 : i32
    %c0_i32_0 = arith.constant 0 : i32
    return %c0_i32 : i32
  }
  func.func @transform_1(%arg0: i32) -> (i32, i32) {
    %c0_i32 = arith.constant 0 : i32
    %c0_i32_0 = arith.constant 0 : i32
    return %arg0, %c0_i32 : i32, i32
  }
  func.func @transform_2(%arg0: i32) -> (i32, i32) {
    %c0_i32 = arith.constant 0 : i32
    %c0_i32_0 = arith.constant 0 : i32
    return %arg0, %c0_i32 : i32, i32
  }
  func.func @transform_3(%arg0: i32) -> (i32, i32) {
    %c0_i32 = arith.constant 0 : i32
    %c0_i32_0 = arith.constant 0 : i32
    return %arg0, %c0_i32 : i32, i32
  }
  func.func @transform_4(%arg0: i32) -> (i32, i32) {
    %c0_i32 = arith.constant 0 : i32
    %c0_i32_0 = arith.constant 0 : i32
    return %arg0, %c0_i32 : i32, i32
  }
}

</mosaic_0001>

<bundles_post_ra>
// kernel: tpu_custom_call.1
= control target key start
LH: loop header
LB: loop body
LE: loop exit
PB: predicated region body
PF: predicated region fallthrough
CT: control target
= control target key end

     0   :  { %11 = vsyncpa [#allocation4], 0  ;;  %s287_s0 = inlined_call_operand.<no memory space> [shape: f32[1], index: 0, kind: input, shape index: {}]   ;;  %s288_s1 = inlined_call_operand.hbm [shape: f32[4,512], index: 1, kind: input, shape index: {}]   ;;  %s289_s2 = inlined_call_operand.hbm [shape: f32[4,512], index: 2, kind: input, shape index: {}]   ;;  %s290_s3 = inlined_call_operand.hbm [shape: f32[4,512], index: 3, kind: output, shape index: {0}]   ;;  %s291_s4 = inlined_call_operand.hbm [shape: f32[4,512], index: 4, kind: output, shape index: {1}]  }
   0x1   :  { %12 = vsyncpa [#allocation7], 0 }
   0x2   :  { %13 = vsyncpa [#allocation5], 0 }
   0x3   :  { %14 = vsyncpa [#allocation10], 0  ;;  %s207_s15 = smov [#allocation3]   ;;  %s208_s17 = smov [#allocation6]  }
   0x4   :  { %s23_s16 = sshll.u32 %s207_s15, 4  ;;  %s33_s18 = sshll.u32 %s208_s17, 4  ;;  %s24_s16 = int_to_ptr.vmem [resolvable:$true] %s23_s16  ;;  %s34_s18 = int_to_ptr.vmem [resolvable:$true] %s33_s18 }
   0x5   :  { %s111_s21 = scalar_lea.hbm %s288_s1, 256 }
   0x6   :  { %p112_p0 = scmp.ne.s32.totalorder %s288_s1, %s111_s21  ;;  %p115_p1 = scmp.lt.u32.totalorder %s111_s21, %s288_s1 }
   0x8   :  { %p117_p2 = pnand %p115_p1, %p112_p0 }
   0xa   :  { %120 = shalt.err (!%p117_p2)
}
   0xb   :  { %s121_s26 = scalar_lea.vmem %s24_s16, 256  ;;  %p126_p4 = scmp.lt.s32.totalorder %s24_s16, %s24_s16 }
   0xc   :  { %p122_p3 = scmp.ne.s32.totalorder %s24_s16, %s121_s26  ;;  %p127_p5 = scmp.lt.s32.totalorder %s121_s26, %s121_s26 }
   0xe   :  { %p128_p6 = por %p127_p5, %p126_p4 }
  0x10   :  { %p129_p7 = pnand %p128_p6, %p122_p3 }
  0x12   :  { %132 = shalt.err (!%p129_p7)
}
  0x13   :  { %26 = dma.hbm_to_vmem [thread:$0]  %s288_s1, 256, %s24_s16, [#allocation4]  }
  0x14   :  { %s133_s5 = scalar_lea.hbm %s289_s2, 256 }
  0x15   :  { %p134_p8 = scmp.ne.s32.totalorder %s289_s2, %s133_s5  ;;  %p137_p9 = scmp.lt.u32.totalorder %s133_s5, %s289_s2 }
  0x17   :  { %p139_p10 = pnand %p137_p9, %p134_p8 }
  0x19   :  { %142 = shalt.err (!%p139_p10)
}
  0x1a   :  { %s143_s10 = scalar_lea.vmem %s34_s18, 256  ;;  %p148_p12 = scmp.lt.s32.totalorder %s34_s18, %s34_s18 }
  0x1b   :  { %p144_p11 = scmp.ne.s32.totalorder %s34_s18, %s143_s10  ;;  %p149_p13 = scmp.lt.s32.totalorder %s143_s10, %s143_s10 }
  0x1d   :  { %p150_p0 = por %p149_p13, %p148_p12 }
  0x1f   :  { %p151_p1 = pnand %p150_p0, %p144_p11 }
  0x21   :  { %154 = shalt.err (!%p151_p1)
}
  0x22   :  { %36 = dma.hbm_to_vmem [thread:$0]  %s289_s2, 256, %s34_s18, [#allocation7]  }
  0x23   :  { %199 = dma.done.wait [#allocation4], 256  }
  0x24   :  { %200 = vsyncadd [#allocation4], 4294967040 }
  0x25   :  { %201 = dma.done.wait [#allocation7], 256  }
  0x26   :  { %202 = vsyncadd [#allocation7], 4294967040  ;;  %v44_v0 = vld [vmem:[#allocation3] sm:$0xff]  ;;  %v46_v1 = vld [vmem:[#allocation6] sm:$0xff]  ;;  %v58_v11 = vstv %s287_s0  ;;  %s209_s2 = smov [#allocation8]   ;;  %s210_s15 = smov [#allocation9]  }
  0x27   :  { %v45_v2 = vld [vmem:[#allocation3 + $0x8] sm:$0xff]  ;;  %v48_v3 = vmul.f32 %v44_v0, %v44_v0  ;;  %v50_v4 = vmul.f32 %v46_v1, %v46_v1  ;;  %v47_v5 = vld [vmem:[#allocation6 + $0x8] sm:$0xff]  ;;  %s79_s14 = sshll.u32 %s209_s2, 4  ;;  %s89_s16 = sshll.u32 %s210_s15, 4  ;;  %s80_s14 = int_to_ptr.vmem [resolvable:$true] %s79_s14  ;;  %s90_s16 = int_to_ptr.vmem [resolvable:$true] %s89_s16 }
  0x28   :  { %v49_v6 = vmul.f32 %v45_v2, %v45_v2  ;;  %v51_v7 = vmul.f32 %v47_v5, %v47_v5  ;;  %s155_s0 = scalar_lea.vmem %s80_s14, 256  ;;  %p160_p3 = scmp.lt.s32.totalorder %s80_s14, %s80_s14 }
  0x29   :  { %v52_v8 = vadd.f32 %v50_v4, %v48_v3  ;;  %p156_p2 = scmp.ne.s32.totalorder %s80_s14, %s155_s0  ;;  %p161_p4 = scmp.lt.s32.totalorder %s155_s0, %s155_s0 }
  0x2a   :  { %v53_v9 = vadd.f32 %v51_v7, %v49_v6 }
  0x2b   :  { %107 = vrsqrt.f32 %v52_v8  ;;  %p162_p5 = por %p161_p4, %p160_p3 }
  0x2c   :  { %109 = vrsqrt.f32 %v53_v9 }
  0x2d   :  { %p163_p6 = pnand %p162_p5, %p156_p2 }
  0x35   :  { %v108_v10 = vpop.eup %107 }
  0x36   :  { %v110_v12 = vpop.eup %109  ;;  %v56_v13 = vmin.f32 %v108_v10, 100000.0 }
  0x37   :  { %v57_v14 = vmin.f32 %v110_v12, 100000.0 }
  0x38   :  { %v59_v15 = vmul.f32 %v58_v11, %v56_v13 }
  0x39   :  { %v60_v16 = vmul.f32 %v58_v11, %v57_v14 }
  0x3a   :  { %v61_v17 = vsub.f32 1.0, %v59_v15 }
  0x3b   :  { %v62_v18 = vsub.f32 1.0, %v60_v16 }
  0x3c   :  { %v63_v19 = vmax.f32 %v61_v17, 0.0 }
  0x3d   :  { %v64_v20 = vmax.f32 %v62_v18, 0.0 }
  0x3e   :  { %v65_v21 = vmul.f32 %v63_v19, %v44_v0  ;;  %v69_v22 = vmul.f32 %v63_v19, %v46_v1 }
  0x3f   :  { %v66_v23 = vmul.f32 %v64_v20, %v45_v2  ;;  %v70_v24 = vmul.f32 %v64_v20, %v47_v5 }
  0x40   :  { %67 = vst [vmem:[#allocation8] sm:$0xff] %v65_v21  ;;  %71 = vst [vmem:[#allocation9] sm:$0xff] %v69_v22 }
  0x41   :  { %68 = vst [vmem:[#allocation8 + $0x8] sm:$0xff] %v66_v23  ;;  %72 = vst [vmem:[#allocation9 + $0x8] sm:$0xff] %v70_v24 }
  0x42   :  { %166 = shalt.err (!%p163_p6)
}
  0x43   :  { %s167_s19 = scalar_lea.hbm %s290_s3, 256 }
  0x44   :  { %p168_p7 = scmp.ne.s32.totalorder %s290_s3, %s167_s19  ;;  %p171_p8 = scmp.lt.u32.totalorder %s167_s19, %s290_s3 }
  0x46   :  { %p173_p9 = pnand %p171_p8, %p168_p7 }
  0x48   :  { %176 = shalt.err (!%p173_p9)
}
  0x49   :  { %82 = dma.vmem_to_hbm [thread:$0]  %s80_s14, 256, %s290_s3, [#allocation5]  }
  0x4a   :  { %s177_s26 = scalar_lea.vmem %s90_s16, 256  ;;  %p182_p11 = scmp.lt.s32.totalorder %s90_s16, %s90_s16 }
  0x4b   :  { %p178_p10 = scmp.ne.s32.totalorder %s90_s16, %s177_s26  ;;  %p183_p12 = scmp.lt.s32.totalorder %s177_s26, %s177_s26 }
  0x4d   :  { %p184_p13 = por %p183_p12, %p182_p11 }
  0x4f   :  { %p185_p0 = pnand %p184_p13, %p178_p10 }
  0x51   :  { %188 = shalt.err (!%p185_p0)
}
  0x52   :  { %s189_s29 = scalar_lea.hbm %s291_s4, 256 }
  0x53   :  { %p190_p1 = scmp.ne.s32.totalorder %s291_s4, %s189_s29  ;;  %p193_p2 = scmp.lt.u32.totalorder %s189_s29, %s291_s4 }
  0x55   :  { %p195_p3 = pnand %p193_p2, %p190_p1 }
  0x57   :  { %198 = shalt.err (!%p195_p3)
}
  0x58   :  { %92 = dma.vmem_to_hbm [thread:$0]  %s90_s16, 256, %s291_s4, [#allocation10]  }
  0x59   :  { %203 = dma.done.wait [#allocation5], 256  }
  0x5a   :  { %204 = vsyncadd [#allocation5], 4294967040 }
  0x5b   :  { %205 = dma.done.wait [#allocation10], 256  }
  0x5c   :  { %206 = vsyncadd [#allocation10], 4294967040 }
  0x5d   :  { %99 = vsyncpa [#allocation4], 1 }
  0x5e   :  { %100 = vsyncpa [#allocation7], 1 }
  0x5f   :  { %101 = vsyncpa [#allocation5], 1 }
  0x60   :  { %102 = vsyncpa [#allocation10], 1 }

</bundles_post_ra>
